<compile_context>
chip_gen: v7x
topology: tpu7x:2x2x1
jax: 0.10.0
libtpu: 0.0.40
codegen_flags: <defaults>
</compile_context>

<pallas_src>
import functools

import jax
import jax.numpy as jnp
from jax.experimental import pallas as pl
from jax.experimental.pallas import tpu as pltpu

_MIB = 1 << 20


def _round_up(x, m):
    return ((x + m - 1) // m) * m


# ---------------------------------------------------------------------------
# Kernels
# ---------------------------------------------------------------------------
def gcn_fused_kernel(adj_ref, x_ref, w1_ref, w2_ref, out_ref, *, out_c):
    """Whole forward pass with the adjacency resident in VMEM (one HBM read).

    out = softmax(D^-1/2 A D^-1/2 relu(D^-1/2 A D^-1/2 x W1) W2)
    """
    # int8 {0,1,2} -> bf16 once; both MXU aggregations reuse the widened tile.
    adj = adj_ref[...].astype(jnp.bfloat16)

    # Degrees from the resident adjacency: free, no extra HBM read.
    deg = jnp.sum(adj.astype(jnp.float32), axis=1, keepdims=True)
    dinv = jnp.where(deg > 0.0, jax.lax.rsqrt(deg), 0.0)

    # conv1: aggregate (bf16 MXU, f32 accum), then dense transform + ReLU.
    xs = (x_ref[...] * dinv).astype(jnp.bfloat16)               # fold column scale
    h = jnp.dot(adj, xs, preferred_element_type=jnp.float32) * dinv
    h = jnp.maximum(jnp.dot(h, w1_ref[...], preferred_element_type=jnp.float32), 0.0)
    # TODO(synk): dropout (p=0.6) is identity in eval mode; training-mode
    # dropout would need pltpu.prng_seed / prng_random_bits.

    # conv2: transform-then-aggregate so the N*N pass contracts over out_p.
    y = jnp.dot(h * dinv, w2_ref[...], preferred_element_type=jnp.float32)
    z = jnp.dot(adj, y.astype(jnp.bfloat16),
                preferred_element_type=jnp.float32) * dinv

    # Masked softmax over the first out_c (unpadded) lanes; exact divide.
    lane = jax.lax.broadcasted_iota(jnp.int32, z.shape, 1)
    z = jnp.where(lane < out_c, z, -jnp.inf)
    z = z - jnp.max(z, axis=1, keepdims=True)
    e = jnp.exp(z)
    out_ref[...] = e / jnp.sum(e, axis=1, keepdims=True)


def gcn_layer1_kernel(adj_ref, xs_ref, dinv_i_ref, w1_ref, w2_ref, y_ref, acc_ref):
    """Row tile i, reducing over adjacency column tiles k:

        y = (D^-1/2 * relu((D^-1/2 * (A @ xs)) @ W1)) @ W2     with xs = D^-1/2 x

    y is already column-pre-scaled for layer 2, which then becomes a pure
    aggregation.  Only A @ xs runs per k; the cheap dense transforms run once
    per row tile at finalize."""
    k = pl.program_id(1)

    @pl.when(k == 0)
    def _():
        acc_ref[...] = jnp.zeros_like(acc_ref)

    # int8 tile -> bf16 right before the MXU; f32 accumulation.
    acc_ref[...] += jnp.dot(adj_ref[...].astype(jnp.bfloat16), xs_ref[...],
                            preferred_element_type=jnp.float32)

    @pl.when(k == pl.num_programs(1) - 1)
    def _():
        h = acc_ref[...] * dinv_i_ref[...]                       # fold row scale
        h = jnp.maximum(
            jnp.dot(h, w1_ref[...], preferred_element_type=jnp.float32), 0.0)
        # TODO(synk): dropout (p=0.6) is identity in eval mode.
        y = jnp.dot(h * dinv_i_ref[...], w2_ref[...],
                    preferred_element_type=jnp.float32)
        y_ref[...] = y.astype(y_ref.dtype)                       # bf16 store


def gcn_layer2_kernel(adj_ref, y_ref, dinv_i_ref, out_ref, *, out_c):
    """out = softmax(D^-1/2 * (A @ y)).  Accumulates directly into the
    resident f32 output block (no scratch, no finalize copy)."""
    k = pl.program_id(1)

    @pl.when(k == 0)
    def _():
        out_ref[...] = jnp.zeros_like(out_ref)

    out_ref[...] += jnp.dot(adj_ref[...].astype(jnp.bfloat16), y_ref[...],
                            preferred_element_type=jnp.float32)

    @pl.when(k == pl.num_programs(1) - 1)
    def _():
        z = out_ref[...] * dinv_i_ref[...]
        lane = jax.lax.broadcasted_iota(jnp.int32, z.shape, 1)
        z = jnp.where(lane < out_c, z, -jnp.inf)                 # mask padded lanes
        z = z - jnp.max(z, axis=1, keepdims=True)
        e = jnp.exp(z)
        out_ref[...] = e / jnp.sum(e, axis=1, keepdims=True)     # exact divide


# ---------------------------------------------------------------------------
# Wrapper
# ---------------------------------------------------------------------------
def _pad_weights(w1, w2):
    in_c, hid = w1.shape
    out_c = w2.shape[1]
    hid_p = _round_up(hid, 128)
    out_p = _round_up(out_c, 128)
    w1p = jnp.zeros((in_c, hid_p), jnp.float32).at[:, :hid].set(w1.astype(jnp.float32))
    w2p = jnp.zeros((hid_p, out_p), jnp.float32).at[:hid, :out_c].set(w2.astype(jnp.float32))
    return w1p, w2p, out_p


def _fused_params(n_p, in_c, out_p):
    # int8 adjacency ref (double-buffered) + bf16 widen + f32 degree temp,
    # plus the small feature / weight / output slabs and headroom.
    need = (n_p * n_p * (2 + 2 + 4)
            + 3 * n_p * out_p * 4
            + n_p * in_c * 8
            + 8 * _MIB)
    return pltpu.CompilerParams(
        vmem_limit_bytes=int(min(48 * _MIB, max(32 * _MIB, need))))


def _tiled_params(tile, in_c, out_p):
    # 48 MiB ceiling keeps the budget valid on v7x (64 MiB/TC) as well as on
    # v5e/v6e's 128 MiB.
    need = (2 * tile * tile                      # double-buffered int8 adj tile
            + 2 * tile * tile                    # bf16 widened tile
            + 2 * tile * max(in_c, out_p) * 2    # double-buffered xs / y tile
            + tile * max(in_c, out_p) * 4        # f32 accumulator scratch
            + 2 * tile * out_p * 4               # resident output block
            + 8 * _MIB)                          # weights, dinv, headroom
    return pltpu.CompilerParams(
        dimension_semantics=("parallel", "arbitrary"),
        vmem_limit_bytes=int(min(48 * _MIB, max(32 * _MIB, need))))


def _gcn_fused(adj, x, w1p, w2p, n, in_c, out_c, out_p):
    n_p = _round_up(n, 128)                       # lane-dense, int8 sublane aligned
    adj_p = jnp.zeros((n_p, n_p), jnp.int8).at[:n, :n].set(adj.astype(jnp.int8))
    x_p = jnp.zeros((n_p, in_c), jnp.float32).at[:n, :].set(x.astype(jnp.float32))
    hid_p = w1p.shape[1]

    out_padded = pl.pallas_call(
        functools.partial(gcn_fused_kernel, out_c=out_c),
        out_shape=jax.ShapeDtypeStruct((n_p, out_p), jnp.float32),
        in_specs=[pl.BlockSpec(memory_space=pltpu.MemorySpace.VMEM)] * 4,
        out_specs=pl.BlockSpec(memory_space=pltpu.MemorySpace.VMEM),
        compiler_params=_fused_params(n_p, in_c, out_p),
        cost_estimate=pl.CostEstimate(
            flops=2 * n_p * n_p * (in_c + out_p) + 2 * n_p * in_c * hid_p
                  + 2 * n_p * hid_p * out_p + n_p * n_p,
            transcendentals=n_p * (1 + out_p),
            bytes_accessed=n_p * n_p + 4 * n_p * (in_c + out_p)),
    )(adj_p, x_p, w1p, w2p)
    return out_padded[:n, :out_c]


def _gcn_tiled(adj, x, w1p, w2p, dinv, n, in_c, out_c, out_p, max_tile):
    assert max_tile % 128 == 0
    tile = min(max_tile, _round_up(n, 128))
    n_p = _round_up(n, tile)
    grid = (n_p // tile, n_p // tile)
    hid_p = w1p.shape[1]

    adj_p = jnp.zeros((n_p, n_p), jnp.int8).at[:n, :n].set(adj.astype(jnp.int8))

    if dinv is None:
        # O(N^2) fallback -- pass dinv (O(E), degree_inv_sqrt_from_edges) to skip it.
        deg = jnp.sum(adj.astype(jnp.float32), axis=1, keepdims=True)
        dinv = jnp.where(deg > 0.0, jax.lax.rsqrt(deg), 0.0)
    dinv = dinv.reshape(n, 1).astype(jnp.float32)
    dinv_p = jnp.zeros((n_p, 1), jnp.float32).at[:n, :].set(dinv)

    # Fold the column normalization into the features once (wrapper-side) and
    # present a bf16 MXU operand; drops the per-step rescale + dinv_k stream.
    xs_p = jnp.zeros((n_p, in_c), jnp.bfloat16).at[:n, :].set(
        (x.astype(jnp.float32) * dinv).astype(jnp.bfloat16))

    cparams = _tiled_params(tile, in_c, out_p)
    adj_bytes = n_p * n_p                                      # int8

    # --- layer 1 aggregation + W1/ReLU/W2 transform; y stored in bf16 ------
    y = pl.pallas_call(
        gcn_layer1_kernel,
        out_shape=jax.ShapeDtypeStruct((n_p, out_p), jnp.bfloat16),
        grid_spec=pltpu.PrefetchScalarGridSpec(
            num_scalar_prefetch=0,
            grid=grid,
            in_specs=[
                pl.BlockSpec((tile, tile), lambda i, k: (i, k)),    # adj tile (int8)
                pl.BlockSpec((tile, in_c), lambda i, k: (k, 0)),    # D^-1/2 x (bf16)
                pl.BlockSpec((tile, 1), lambda i, k: (i, 0)),       # D^-1/2 (rows)
                pl.BlockSpec((in_c, hid_p), lambda i, k: (0, 0)),   # W1 (padded)
                pl.BlockSpec((hid_p, out_p), lambda i, k: (0, 0)),  # W2 (padded)
            ],
            out_specs=pl.BlockSpec((tile, out_p), lambda i, k: (i, 0)),
            scratch_shapes=[pltpu.VMEM((tile, in_c), jnp.float32)],
        ),
        compiler_params=cparams,
        cost_estimate=pl.CostEstimate(
            flops=2 * n_p * n_p * in_c + 2 * n_p * in_c * hid_p
                  + 2 * n_p * hid_p * out_p,
            transcendentals=0,
            bytes_accessed=adj_bytes + 2 * (n_p // tile) * n_p * in_c
                           + 2 * n_p * out_p),
    )(adj_p, xs_p, dinv_p, w1p, w2p)

    # --- layer 2 aggregation + row scale + masked softmax ------------------
    out_padded = pl.pallas_call(
        functools.partial(gcn_layer2_kernel, out_c=out_c),
        out_shape=jax.ShapeDtypeStruct((n_p, out_p), jnp.float32),
        grid_spec=pltpu.PrefetchScalarGridSpec(
            num_scalar_prefetch=0,
            grid=grid,
            in_specs=[
                pl.BlockSpec((tile, tile), lambda i, k: (i, k)),    # adj tile (int8)
                pl.BlockSpec((tile, out_p), lambda i, k: (k, 0)),   # y (bf16)
                pl.BlockSpec((tile, 1), lambda i, k: (i, 0)),       # D^-1/2 (rows)
            ],
            out_specs=pl.BlockSpec((tile, out_p), lambda i, k: (i, 0)),
        ),
        compiler_params=cparams,
        cost_estimate=pl.CostEstimate(
            flops=2 * n_p * n_p * out_p,
            transcendentals=n_p * out_p,
            bytes_accessed=adj_bytes + 2 * (n_p // tile) * n_p * out_p
                           + 4 * n_p * out_p),
    )(adj_p, y, dinv_p)

    return out_padded[:n, :out_c]


def gcn_forward(adj, x, w1, w2, *, dinv=None, fused_max_nodes=1024, max_tile=1024):
    """2-layer GCN forward.

    adj:  (N, N) dense symmetric adjacency WITH self loops; entries must be
          in {0, 1, 2} (exactly representable in the int8 HBM layout).
    dinv: optional (N, 1) f32 of 1/sqrt(degree), e.g. from
          degree_inv_sqrt_from_edges.  Only the tiled path uses it; the fused
          path derives it from the VMEM-resident adjacency for free.
    """
    n = adj.shape[0]
    in_c = x.shape[1]
    out_c = w2.shape[1]
    w1p, w2p, out_p = _pad_weights(w1, w2)

    if n <= fused_max_nodes:
        return _gcn_fused(adj, x, w1p, w2p, n, in_c, out_c, out_p)
    return _gcn_tiled(adj, x, w1p, w2p, dinv, n, in_c, out_c, out_p, max_tile)


# ---------------------------------------------------------------------------
# Host-side helpers (mirror the PyTorch module's setup)
# ---------------------------------------------------------------------------
def build_adjacency(edge_index, num_nodes):
    """Dense symmetric adjacency + self loops (mirrors normalize_adjacency's
    set-semantics scatter + eye).  edge_index must not already contain self
    loops."""
    adj = jnp.zeros((num_nodes, num_nodes), dtype=jnp.float32)
    adj = adj.at[edge_index[0], edge_index[1]].set(1.0)
    adj = adj.at[edge_index[1], edge_index[0]].set(1.0)
    return adj + jnp.eye(num_nodes, dtype=jnp.float32)


def degree_inv_sqrt_from_edges(edge_index, num_nodes):
    """O(E) 1/sqrt(degree) for the tiled path (avoids an O(N^2) adjacency
    read).  Assumes each undirected edge appears exactly once, no duplicates
    and no self loops -- the conditions under which build_adjacency's
    set-scatter equals an add-scatter."""
    ones = jnp.ones(edge_index.shape[1], jnp.float32)
    deg = jnp.zeros((num_nodes,), jnp.float32)
    deg = deg.at[edge_index[0]].add(ones).at[edge_index[1]].add(ones) + 1.0
    return jax.lax.rsqrt(deg).reshape(num_nodes, 1)


def xavier_uniform(key, fan_in, fan_out):
    bound = (6.0 / (fan_in + fan_out)) ** 0.5
    return jax.random.uniform(key, (fan_in, fan_out), jnp.float32, -bound, bound)


def gcn_reference(adj, x, w1, w2):
    deg = jnp.sum(adj, axis=1, keepdims=True)
    dinv = jnp.where(deg > 0.0, 1.0 / jnp.sqrt(deg), 0.0)
    a_hat = adj * dinv * dinv.T
    h = jnp.maximum(a_hat @ x @ w1, 0.0)
    z = a_hat @ h @ w2
    return jax.nn.softmax(z, axis=1)


if __name__ == "__main__":
    in_channels = 8
    hidden_channels = 32
    out_channels = 8

    key = jax.random.PRNGKey(0)
    k_x1, k_x2, k_w1, k_w2 = jax.random.split(key, 4)

    w1 = xavier_uniform(k_w1, in_channels, hidden_channels)
    w2 = xavier_uniform(k_w2, hidden_channels, out_channels)

    # --- small graph (ring + chords) -> fused single-call path -------------
    num_nodes = 16
    src = list(range(num_nodes)) + [0, 2, 4, 6]
    dst = [(i + 1) % num_nodes for i in range(num_nodes)] + [8, 10, 12, 14]
    edge_index = jnp.array([src, dst], dtype=jnp.int32)
    n = int(edge_index.max()) + 1          # matches torch.max(edge_index) + 1

    x = jax.random.normal(k_x1, (n, in_channels), dtype=jnp.float32)
    adj = build_adjacency(edge_index, n)

    out = jax.block_until_ready(jax.jit(gcn_forward)(adj, x, w1, w2))
    ref = gcn_reference(adj, x, w1, w2)
    assert out.shape == (n, out_channels)
    assert bool(jnp.allclose(jnp.sum(out, axis=1), 1.0, atol=1e-3))
    assert bool(jnp.allclose(out, ref, atol=2e-2, rtol=2e-2))

    # --- larger graph -> tiled two-call path (forced), edge-list degrees ---
    n2 = 300
    src2 = list(range(n2)) * 2
    dst2 = [(i + 1) % n2 for i in range(n2)] + [(i + 7) % n2 for i in range(n2)]
    edge_index2 = jnp.array([src2, dst2], dtype=jnp.int32)

    x2 = jax.random.normal(k_x2, (n2, in_channels), dtype=jnp.float32)
    adj2 = build_adjacency(edge_index2, n2)
    dinv2 = degree_inv_sqrt_from_edges(edge_index2, n2)

    tiled_fwd = jax.jit(
        functools.partial(gcn_forward, fused_max_nodes=0, max_tile=128))
    out2 = jax.block_until_ready(tiled_fwd(adj2, x2, w1, w2, dinv=dinv2))
    ref2 = gcn_reference(adj2, x2, w1, w2)
    assert out2.shape == (n2, out_channels)
    assert bool(jnp.allclose(jnp.sum(out2, axis=1), 1.0, atol=1e-3))
    assert bool(jnp.allclose(out2, ref2, atol=2e-2, rtol=2e-2))

    print("KERNEL_OK")
</pallas_src>

<mosaic_0001>
module attributes {stable_mosaic.version = 11 : i64} {
  func.func @gcn_fused_kernel(%arg0: memref<128x128xi8, #tpu.memory_space<vmem>>, %arg1: memref<128x8xf32, #tpu.memory_space<vmem>>, %arg2: memref<8x128xf32, #tpu.memory_space<vmem>>, %arg3: memref<128x128xf32, #tpu.memory_space<vmem>>, %arg4: memref<128x128xf32, #tpu.memory_space<vmem>>) attributes {dimension_semantics = [], scalar_prefetch = 0 : i64, scratch_operands = 0 : i64, tpu.core_type = #tpu.core_type<tc>} {
    %c0 = arith.constant 0 : index
    %c0_0 = arith.constant 0 : index
    %0 = vector.load %arg0[%c0, %c0_0] : memref<128x128xi8, #tpu.memory_space<vmem>>, vector<128x128xi8>
    %1 = arith.sitofp %0 : vector<128x128xi8> to vector<128x128xbf16>
    %2 = arith.extf %1 : vector<128x128xbf16> to vector<128x128xf32>
    %cst = arith.constant dense<0.000000e+00> : vector<128xf32>
    %3 = vector.multi_reduction <add>, %2, %cst [1] : vector<128x128xf32> to vector<128xf32>
    %4 = vector.shape_cast %3 : vector<128xf32> to vector<128x1xf32>
    %cst_1 = arith.constant 0.000000e+00 : f32
    %5 = vector.broadcast %cst_1 : f32 to vector<128x1xf32>
    %6 = arith.cmpf ogt, %4, %5 : vector<128x1xf32>
    %7 = math.rsqrt %4 : vector<128x1xf32>
    %cst_2 = arith.constant 0.000000e+00 : f32
    %8 = vector.broadcast %cst_2 : f32 to vector<128x1xf32>
    %9 = arith.select %6, %7, %8 : vector<128x1xi1>, vector<128x1xf32>
    %c0_3 = arith.constant 0 : index
    %c0_4 = arith.constant 0 : index
    %10 = vector.load %arg1[%c0_3, %c0_4] : memref<128x8xf32, #tpu.memory_space<vmem>>, vector<128x8xf32>
    %11 = vector.broadcast %9 : vector<128x1xf32> to vector<128x8xf32>
    %12 = arith.mulf %10, %11 : vector<128x8xf32>
    %13 = arith.truncf %12 : vector<128x8xf32> to vector<128x8xbf16>
    %cst_5 = arith.constant dense<0.000000e+00> : vector<128x8xf32>
    %14 = tpu.matmul %1, %13, %cst_5 {dimension_numbers = #tpu.dot_dimension_numbers<[1], [0], [0], [1], [0, 0, 1, 1], [], []>} : vector<128x128xbf16>, vector<128x8xbf16>, vector<128x8xf32> -> vector<128x8xf32>
    %15 = vector.broadcast %9 : vector<128x1xf32> to vector<128x8xf32>
    %16 = arith.mulf %14, %15 : vector<128x8xf32>
    %c0_6 = arith.constant 0 : index
    %c0_7 = arith.constant 0 : index
    %17 = vector.load %arg2[%c0_6, %c0_7] : memref<8x128xf32, #tpu.memory_space<vmem>>, vector<8x128xf32>
    %cst_8 = arith.constant dense<0.000000e+00> : vector<128x128xf32>
    %18 = tpu.matmul %16, %17, %cst_8 {dimension_numbers = #tpu.dot_dimension_numbers<[1], [0], [0], [1], [0, 0, 1, 1], [], []>} : vector<128x8xf32>, vector<8x128xf32>, vector<128x128xf32> -> vector<128x128xf32>
    %cst_9 = arith.constant 0.000000e+00 : f32
    %19 = vector.broadcast %cst_9 : f32 to vector<128x128xf32>
    %20 = arith.maximumf %18, %19 : vector<128x128xf32>
    %21 = vector.broadcast %9 : vector<128x1xf32> to vector<128x128xf32>
    %22 = arith.mulf %20, %21 : vector<128x128xf32>
    %c0_10 = arith.constant 0 : index
    %c0_11 = arith.constant 0 : index
    %23 = vector.load %arg3[%c0_10, %c0_11] : memref<128x128xf32, #tpu.memory_space<vmem>>, vector<128x128xf32>
    %cst_12 = arith.constant dense<0.000000e+00> : vector<128x128xf32>
    %24 = tpu.matmul %22, %23, %cst_12 {dimension_numbers = #tpu.dot_dimension_numbers<[1], [0], [0], [1], [0, 0, 1, 1], [], []>} : vector<128x128xf32>, vector<128x128xf32>, vector<128x128xf32> -> vector<128x128xf32>
    %25 = arith.truncf %24 : vector<128x128xf32> to vector<128x128xbf16>
    %cst_13 = arith.constant dense<0.000000e+00> : vector<128x128xf32>
    %26 = tpu.matmul %1, %25, %cst_13 {dimension_numbers = #tpu.dot_dimension_numbers<[1], [0], [0], [1], [0, 0, 1, 1], [], []>} : vector<128x128xbf16>, vector<128x128xbf16>, vector<128x128xf32> -> vector<128x128xf32>
    %27 = vector.broadcast %9 : vector<128x1xf32> to vector<128x128xf32>
    %28 = arith.mulf %26, %27 : vector<128x128xf32>
    %29 = tpu.iota {dimensions = array<i32: 1>} : vector<128x128xi32>
    %c8_i32 = arith.constant 8 : i32
    %30 = vector.broadcast %c8_i32 : i32 to vector<128x128xi32>
    %31 = arith.cmpi slt, %29, %30 : vector<128x128xi32>
    %cst_14 = arith.constant 0xFF800000 : f32
    %32 = vector.broadcast %cst_14 : f32 to vector<128x128xf32>
    %33 = arith.select %31, %28, %32 : vector<128x128xi1>, vector<128x128xf32>
    %cst_15 = arith.constant dense<0xFF800000> : vector<128xf32>
    %34 = vector.multi_reduction <maximumf>, %33, %cst_15 [1] : vector<128x128xf32> to vector<128xf32>
    %35 = vector.shape_cast %34 : vector<128xf32> to vector<128x1xf32>
    %36 = vector.broadcast %35 : vector<128x1xf32> to vector<128x128xf32>
    %37 = arith.subf %33, %36 : vector<128x128xf32>
    %38 = math.exp %37 : vector<128x128xf32>
    %cst_16 = arith.constant dense<0.000000e+00> : vector<128xf32>
    %39 = vector.multi_reduction <add>, %38, %cst_16 [1] : vector<128x128xf32> to vector<128xf32>
    %40 = vector.shape_cast %39 : vector<128xf32> to vector<128x1xf32>
    %41 = vector.broadcast %40 : vector<128x1xf32> to vector<128x128xf32>
    %42 = arith.divf %38, %41 : vector<128x128xf32>
    %c0_17 = arith.constant 0 : index
    %c0_18 = arith.constant 0 : index
    %43 = vector.load %arg4[%c0_17, %c0_18] : memref<128x128xf32, #tpu.memory_space<vmem>>, vector<128x128xf32>
    tpu.vector_store %arg4[%c0_17, %c0_18], %42 {strides = array<i32>} : memref<128x128xf32, #tpu.memory_space<vmem>>, vector<128x128xf32>,
    return
  }
}

</mosaic_0001>

<bundles_post_ra>
// kernel: gcn_forward.1
= control target key start
LH: loop header
LB: loop body
LE: loop exit
PB: predicated region body
PF: predicated region fallthrough
CT: control target
= control target key end

     0   :  { %s1829_s0 = inlined_call_operand.vmem [shape: s8[128,128], index: 0, kind: input, shape index: {}]   ;;  %s1830_s1 = inlined_call_operand.vmem [shape: f32[128,8], index: 1, kind: input, shape index: {}]   ;;  %s1831_s2 = inlined_call_operand.vmem [shape: f32[8,128], index: 2, kind: input, shape index: {}]   ;;  %s1832_s3 = inlined_call_operand.vmem [shape: f32[128,128], index: 3, kind: input, shape index: {}]   ;;  %s1833_s4 = inlined_call_operand.vmem [shape: f32[128,128], index: 4, kind: output, shape index: {}]  }
   0x1   :  { %v18_v0 = vld [vmem:[%s1829_s0] sm:$0xff]  ;;  %v19_v3 = vld [vmem:[%s1829_s0 + $0x8] sm:$0xff]  ;;  %v20_v12 = vld [vmem:[%s1829_s0 + $0x10] sm:$0xff] }
   0x2   :  { %v1386_v1 = vunpack.c.h.s8.bf16 %v18_v0  ;;  %v1388_v2 = vunpack.c.l.s8.bf16 %v18_v0  ;;  %v1398_v8 = vunpack.c.l.s8.bf16 %v19_v3  ;;  %v1402_v11 = vunpack.c.h.s8.bf16 %v19_v3  ;;  %v21_v19 = vld [vmem:[%s1829_s0 + $0x18] sm:$0xff]  ;;  %v126_v40 = vld [vmem:[%s1830_s1] sm:$0xff]  ;;  %v127_v41 = vld [vmem:[%s1830_s1 + $0x8] sm:$0xff] }
   0x3   :  { %v1409_v15 = vunpack.c.l.s8.bf16 %v20_v12  ;;  %v1413_v18 = vunpack.c.h.s8.bf16 %v20_v12  ;;  %v1420_v22 = vunpack.c.l.s8.bf16 %v21_v19  ;;  %v1424_v25 = vunpack.c.h.s8.bf16 %v21_v19  ;;  %v129_v42 = vld [vmem:[%s1830_s1 + $0x18] sm:$0xff]  ;;  %v128_v49 = vld [vmem:[%s1830_s1 + $0x10] sm:$0xff]  ;;  %v130_v54 = vld [vmem:[%s1830_s1 + $0x20] sm:$0xff] }
   0x4   :  { %v32_v4 = vunpack.c.l.bf16 %v1386_v1  ;;  %v30_v5 = vunpack.c.l.bf16 %v1388_v2  ;;  %1084 = vmatprep.mubr.bf16.mxu0 %v1388_v2  ;;  %v33_v6 = vunpack.c.h.bf16 %v1386_v1  ;;  %v31_v7 = vunpack.c.h.bf16 %v1388_v2  ;;  %v131_v55 = vld [vmem:[%s1830_s1 + $0x28] sm:$0xff] }
   0x5   :  { %v35_v9 = vunpack.c.h.bf16 %v1398_v8  ;;  %v34_v10 = vunpack.c.l.bf16 %v1398_v8  ;;  %v37_v13 = vunpack.c.h.bf16 %v1402_v11  ;;  %v36_v14 = vunpack.c.l.bf16 %v1402_v11 }
   0x6   :  { %50 = vadd.xlane.f32.xlu1 %v32_v4  ;;  %46 = vadd.xlane.f32.xlu0 %v30_v5  ;;  %v39_v16 = vunpack.c.h.bf16 %v1409_v15  ;;  %v38_v17 = vunpack.c.l.bf16 %v1409_v15  ;;  %v41_v20 = vunpack.c.h.bf16 %v1413_v18  ;;  %v40_v21 = vunpack.c.l.bf16 %v1413_v18  ;;  %v132_v5 = vld [vmem:[%s1830_s1 + $0x30] sm:$0xff] }
   0x7   :  { %v43_v23 = vunpack.c.h.bf16 %v1420_v22  ;;  %v42_v24 = vunpack.c.l.bf16 %v1420_v22  ;;  %v45_v26 = vunpack.c.h.bf16 %v1424_v25  ;;  %v44_v27 = vunpack.c.l.bf16 %v1424_v25 }
   0xa   :  { %52 = vadd.xlane.f32.xlu1 %v33_v6  ;;  %48 = vadd.xlane.f32.xlu0 %v31_v7  ;;  %v133_v6 = vld [vmem:[%s1830_s1 + $0x38] sm:$0xff] }
   0xe   :  { %56 = vadd.xlane.f32.xlu1 %v35_v9  ;;  %54 = vadd.xlane.f32.xlu0 %v34_v10 }
  0x12   :  { %60 = vadd.xlane.f32.xlu1 %v37_v13  ;;  %58 = vadd.xlane.f32.xlu0 %v36_v14 }
  0x16   :  { %64 = vadd.xlane.f32.xlu1 %v39_v16  ;;  %62 = vadd.xlane.f32.xlu0 %v38_v17 }
  0x1a   :  { %68 = vadd.xlane.f32.xlu1 %v41_v20  ;;  %66 = vadd.xlane.f32.xlu0 %v40_v21  ;;  %v134_v20 = vld [vmem:[%s1830_s1 + $0x40] sm:$0xff]  ;;  %v135_v21 = vld [vmem:[%s1830_s1 + $0x48] sm:$0xff] }
  0x1e   :  { %72 = vadd.xlane.f32.xlu1 %v43_v23  ;;  %70 = vadd.xlane.f32.xlu0 %v42_v24 }
  0x22   :  { %76 = vadd.xlane.f32.xlu1 %v45_v26  ;;  %74 = vadd.xlane.f32.xlu0 %v44_v27 }
  0x93   :  { %v51_v28 = vpop.xlane.xlu1 %50  ;;  %v47_v29 = vpop.xlane.xlu0 %46 }
  0x94   :  { %1262 = vrsqrt.f32 %v47_v29  ;;  %vm78_vm0 = vcmp.gt.f32.partialorder %v47_v29, 0.0  ;;  %vm80_vm2 = vcmp.gt.f32.partialorder %v51_v28, 0.0 }
  0x95   :  { %1264 = vrsqrt.f32 %v51_v28 }
  0x97   :  { %v53_v30 = vpop.xlane.xlu1 %52  ;;  %v49_v31 = vpop.xlane.xlu0 %48 }
  0x98   :  { %1266 = vrsqrt.f32 %v53_v30  ;;  %vm81_vm1 = vcmp.gt.f32.partialorder %v53_v30, 0.0  ;;  %vm79_vm3 = vcmp.gt.f32.partialorder %v49_v31, 0.0 }
  0x99   :  { %1268 = vrsqrt.f32 %v49_v31 }
  0x9b   :  { %v57_v32 = vpop.xlane.xlu1 %56  ;;  %v55_v33 = vpop.xlane.xlu0 %54 }
  0x9c   :  { %1270 = vrsqrt.f32 %v57_v32  ;;  %vm83_vm4 = vcmp.gt.f32.partialorder %v57_v32, 0.0  ;;  %vm82_vm5 = vcmp.gt.f32.partialorder %v55_v33, 0.0 }
  0x9d   :  { %1272 = vrsqrt.f32 %v55_v33  ;;  %v136_v33 = vld [vmem:[%s1830_s1 + $0x50] sm:$0xff] }
  0x9e   :  { %v1263_v34 = vpop.eup %1262 }
  0x9f   :  { %v61_v35 = vpop.xlane.xlu1 %60  ;;  %v59_v36 = vpop.xlane.xlu0 %58  ;;  %v1428_v39 = vsel %vm78_vm0, %v1263_v34, 0.0  ;;  %v137_v34 = vld [vmem:[%s1830_s1 + $0x58] sm:$0xff]  ;;  %vm280_vm0 = vcmask 64512  }
  0xa0   :  { %1274 = vrsqrt.f32 %v61_v35  ;;  %v1265_v37 = vpop.eup %1264  ;;  %v142_v50 = vmul.f32 %v126_v40, %v1428_v39  ;;  %vm85_vm6 = vcmp.gt.f32.partialorder %v61_v35, 0.0  ;;  %vm84_vm7 = vcmp.gt.f32.partialorder %v59_v36, 0.0 }
  0xa1   :  { %1276 = vrsqrt.f32 %v59_v36  ;;  %v1441_v47 = vsel %vm80_vm2, %v1265_v37, 0.0 }
  0xa2   :  { %v1267_v38 = vpop.eup %1266  ;;  %v144_v61 = vmul.f32 %v128_v49, %v1441_v47 }
  0xa3   :  { %v1269_v43 = vpop.eup %1268  ;;  %v1439_v44 = vsel %vm81_vm1, %v1267_v38, 0.0  ;;  %v65_v45 = vpop.xlane.xlu1 %64 }
  0xa4   :  { %v63_v46 = vpop.xlane.xlu0 %62  ;;  %v1443_v48 = vsel %vm79_vm3, %v1269_v43, 0.0  ;;  %1278 = vrsqrt.f32 %v65_v45  ;;  %v145_v52 = vmul.f32 %v129_v42, %v1439_v44  ;;  %vm87_vm8 = vcmp.gt.f32.partialorder %v65_v45, 0.0  ;;  %v138_v43 = vld [vmem:[%s1830_s1 + $0x60] sm:$0xff]  ;;  %v139_v45 = vld [vmem:[%s1830_s1 + $0x68] sm:$0xff] }
  0xa5   :  { %1280 = vrsqrt.f32 %v63_v46  ;;  %v143_v51 = vmul.f32 %v127_v41, %v1443_v48  ;;  %vm86_vm9 = vcmp.gt.f32.partialorder %v63_v46, 0.0 }
  0xa6   :  { %v1271_v53 = vpop.eup %1270  ;;  %v159_v63 = vpack.c.bf16 %v145_v52, %v144_v61 }
  0xa7   :  { %v1273_v56 = vpop.eup %1272  ;;  %v1457_v57 = vsel %vm83_vm4, %v1271_v53, 0.0  ;;  %v69_v58 = vpop.xlane.xlu1 %68  ;;  %v158_v60 = vpack.c.bf16 %v143_v51, %v142_v50 }
  0xa8   :  { %v67_v59 = vpop.xlane.xlu0 %66  ;;  %v1460_v62 = vsel %vm82_vm5, %v1273_v56, 0.0  ;;  %1282 = vrsqrt.f32 %v69_v58  ;;  %v147_v3 = vmul.f32 %v131_v55, %v1457_v57  ;;  %vm89_vm10 = vcmp.gt.f32.partialorder %v69_v58, 0.0  ;;  %v140_v55 = vld [vmem:[%s1830_s1 + $0x70] sm:$0xff]  ;;  %v141_v56 = vld [vmem:[%s1830_s1 + $0x78] sm:$0xff] }
  0xa9   :  { %1284 = vrsqrt.f32 %v67_v59  ;;  %1068 = vmatprep.subr.bf16.mxu0 %v158_v60  ;;  %v146_v0 = vmul.f32 %v130_v54, %v1460_v62  ;;  %vm88_vm11 = vcmp.gt.f32.partialorder %v67_v59, 0.0 }
  0xaa   :  { %v1275_v4 = vpop.eup %1274  ;;  %1069 = vmatpush3.bf16.msra.mxu0 %v158_v60 }
  0xab   :  { %v1277_v7 = vpop.eup %1276  ;;  %v1470_v9 = vsel %vm85_vm6, %v1275_v4, 0.0  ;;  %1070 = vmatprep.subr.bf16.mxu0 %v159_v63  ;;  %v73_v10 = vpop.xlane.xlu1 %72  ;;  %v160_v14 = vpack.c.bf16 %v147_v3, %v146_v0  ;;  %v279_v4 = vld [vmem:[%s1831_s2] sm:$0xff] }
  0xac   :  { %v71_v12 = vpop.xlane.xlu0 %70  ;;  %v1472_v13 = vsel %vm84_vm7, %v1277_v7, 0.0  ;;  %1286 = vrsqrt.f32 %v73_v10  ;;  %v149_v17 = vmul.f32 %v133_v6, %v1470_v9  ;;  %vm91_vm12 = vcmp.gt.f32.partialorder %v73_v10, 0.0  ;;  %1100 = vmatprep.subr.mxu1 %v279_v4  ;;  %v507_v6 = vld [vmem:[%s1832_s3 + $0x8] sm:$0xff] }
  0xad   :  { %1288 = vrsqrt.f32 %v71_v12  ;;  %v148_v16 = vmul.f32 %v132_v5, %v1472_v13  ;;  %vm90_vm13 = vcmp.gt.f32.partialorder %v71_v12, 0.0  ;;  %1101 = vmatpush3.msra.mxu1 %v279_v4  ;;  %v506_v5 = vld [vmem:[%s1832_s3] sm:$0xff] }
  0xae   :  { %v1279_v19 = vpop.eup %1278  ;;  %1071 = vmatpush3.bf16.msra.mxu0 %v159_v63  ;;  %v1214_v7 = vpack.c.bf16 %v507_v6, %v506_v5  ;;  %v518_v5 = vld [vmem:[%s1832_s3 + $0x60] sm:$0xff]  ;;  %v519_v6 = vld [vmem:[%s1832_s3 + $0x68] sm:$0xff] }
  0xaf   :  { %v1281_v23 = vpop.eup %1280  ;;  %v1482_v24 = vsel %vm87_vm8, %v1279_v19, 0.0  ;;  %1072 = vmatprep.subr.bf16.mxu0 %v160_v14  ;;  %v77_v26 = vpop.xlane.xlu1 %76  ;;  %v161_v29 = vpack.c.bf16 %v149_v17, %v148_v16 }
  0xb0   :  { %v75_v27 = vpop.xlane.xlu0 %74  ;;  %v1484_v28 = vsel %vm86_vm9, %v1281_v23, 0.0  ;;  %1290 = vrsqrt.f32 %v77_v26  ;;  %v151_v31 = vmul.f32 %v135_v21, %v1482_v24  ;;  %vm93_vm14 = vcmp.gt.f32.partialorder %v77_v26, 0.0  ;;  %1215 = vmatprep.subr.bf16.mxu1 %v1214_v7  ;;  %v510_v26 = vld [vmem:[%s1832_s3 + $0x20] sm:$0xff] }
  0xb1   :  { %1292 = vrsqrt.f32 %v75_v27  ;;  %v150_v30 = vmul.f32 %v134_v20, %v1484_v28  ;;  %vm92_vm15 = vcmp.gt.f32.partialorder %v75_v27, 0.0  ;;  %v511_v27 = vld [vmem:[%s1832_s3 + $0x28] sm:$0xff] }
  0xb2   :  { %v1283_v32 = vpop.eup %1282  ;;  %1073 = vmatpush3.bf16.msra.mxu0 %v160_v14  ;;  %v509_v14 = vld [vmem:[%s1832_s3 + $0x18] sm:$0xff] }
  0xb3   :  { %v1285_v35 = vpop.eup %1284  ;;  %v1494_v36 = vsel %vm89_vm10, %v1283_v32, 0.0  ;;  %1074 = vmatprep.subr.bf16.mxu0 %v161_v29  ;;  %v162_v38 = vpack.c.bf16 %v151_v31, %v150_v30  ;;  %v1222_v31 = vpack.c.bf16 %v511_v27, %v510_v26  ;;  %v521_v26 = vld [vmem:[%s1832_s3 + $0x78] sm:$0xff] }
  0xb4   :  { %v1496_v37 = vsel %vm88_vm11, %v1285_v35, 0.0  ;;  %v153_v41 = vmul.f32 %v137_v34, %v1494_v36  ;;  %v513_v34 = vld [vmem:[%s1832_s3 + $0x38] sm:$0xff] }
  0xb5   :  { %v152_v40 = vmul.f32 %v136_v33, %v1496_v37  ;;  %v512_v33 = vld [vmem:[%s1832_s3 + $0x30] sm:$0xff] }
  0xb6   :  { %v1287_v42 = vpop.eup %1286  ;;  %1075 = vmatpush3.bf16.msra.mxu0 %v161_v29 }
  0xb7   :  { %v1289_v46 = vpop.eup %1288  ;;  %v1506_v49 = vsel %vm91_vm12, %v1287_v42, 0.0  ;;  %1076 = vmatprep.subr.bf16.mxu0 %v162_v38  ;;  %v163_v51 = vpack.c.bf16 %v153_v41, %v152_v40  ;;  %v1226_v42 = vpack.c.bf16 %v513_v34, %v512_v33 }
  0xb8   :  { %v1508_v50 = vsel %vm90_vm13, %v1289_v46, 0.0  ;;  %v155_v53 = vmul.f32 %v139_v45, %v1506_v49  ;;  %v514_v45 = vld [vmem:[%s1832_s3 + $0x40] sm:$0xff]  ;;  %v515_v46 = vld [vmem:[%s1832_s3 + $0x48] sm:$0xff] }
  0xb9   :  { %v154_v52 = vmul.f32 %v138_v43, %v1508_v50 }
  0xba   :  { %v1291_v54 = vpop.eup %1290  ;;  %1077 = vmatpush3.bf16.msra.mxu0 %v162_v38 }
  0xbb   :  { %v1293_v58 = vpop.eup %1292  ;;  %v1518_v59 = vsel %vm93_vm14, %v1291_v54, 0.0  ;;  %1078 = vmatprep.subr.bf16.mxu0 %v163_v51  ;;  %v164_v61 = vpack.c.bf16 %v155_v53, %v154_v52  ;;  %v1230_v53 = vpack.c.bf16 %v515_v46, %v514_v45 }
  0xbc   :  { %v1520_v60 = vsel %vm92_vm15, %v1293_v58, 0.0  ;;  %v157_v0 = vmul.f32 %v141_v56, %v1518_v59  ;;  %v517_v56 = vld [vmem:[%s1832_s3 + $0x58] sm:$0xff] }
  0xbd   :  { %v156_v63 = vmul.f32 %v140_v55, %v1520_v60  ;;  %v516_v55 = vld [vmem:[%s1832_s3 + $0x50] sm:$0xff] }
  0xbe   :  { %1079 = vmatpush3.bf16.msra.mxu0 %v163_v51 }
  0xbf   :  { %1080 = vmatprep.subr.bf16.mxu0 %v164_v61  ;;  %v165_v3 = vpack.c.bf16 %v157_v0, %v156_v63 }
  0xc2   :  { %1081 = vmatpush3.bf16.msra.mxu0 %v164_v61 }
  0xc3   :  { %1082 = vmatprep.subr.bf16.mxu0 %v165_v3 }
  0xc6   :  { %1083 = vmatpush3.bf16.msra.mxu0 %v165_v3  ;;  %v1234_v3 = vpack.c.bf16 %v517_v56, %v516_v55 }
  0xc9   :  { %1085 = vmatmul.mubr.bf16.vlgmr.msra.gmra.mrb[0].mxu0 %v1386_v1 }
  0xca   :  { %1088 = vmatprep.mubr.bf16.mxu0 %v1398_v8 }
  0xd1   :  { %1089 = vmatmul.mubr.bf16.gmra.mrb[4].mxu0 %v1402_v11 }
  0xd2   :  { %1092 = vmatprep.mubr.bf16.mxu0 %v1409_v15 }
  0xd9   :  { %1093 = vmatmul.mubr.bf16.gmra.mrb[8].mxu0 %v1413_v18 }
  0xda   :  { %1096 = vmatprep.mubr.bf16.mxu0 %v1420_v22 }
  0xe1   :  { %1097 = vmatmul.mubr.bf16.gmra.mrb[12].mxu0 %v1424_v25 }
  0xe2   :  { %1198 = vmatprep.mubr.bf16.mxu0 %v1388_v2  ;;  %v508_v2 = vld [vmem:[%s1832_s3 + $0x10] sm:$0xff] }
  0xe3   :  { %v1218_v21 = vpack.c.bf16 %v509_v14, %v508_v2 }
 0x19c   :  { %v1086_v10 = vpop.f32.mrb[0].mxu0 }
 0x19d   :  { %v200_v12 = vpop.f32.mrb[1].mxu0  ;;  %v265_v23 = vmul.f32 %v1086_v10, %v1441_v47 }
 0x19e   :  { %v263_v16 = vmul.f32 %v200_v12, %v1428_v39  ;;  %v1087_v17 = vpop.f32.mrb[2].mxu0  ;;  %v1238_v12 = vpack.c.bf16 %v519_v6, %v518_v5 }
 0x19f   :  { %v203_v19 = vpop.f32.mrb[3].mxu0  ;;  %v266_v29 = vmul.f32 %v1087_v17, %v1439_v44 }
 0x1a0   :  { %v264_v20 = vmul.f32 %v203_v19, %v1443_v48  ;;  %1102 = vmatprep.mubr.msk.f32.mxu1 %vm280_vm0, %v263_v16 }
 0x1a2   :  { %1103 = vmatmul.mubr.msk.f32.vlgmr.msra.gmra.mrb[0].mxu1 %vm280_vm0, %v264_v20 }
 0x1a3   :  { %1105 = vmatprep.mubr.msk.f32.mxu1 %vm280_vm0, %v265_v23  ;;  %1217 = vmatpush3.bf16.msra.mxu1 %v1214_v7  ;;  %v520_v23 = vld [vmem:[%s1832_s3 + $0x70] sm:$0xff] }
 0x1a4   :  { %v1090_v30 = vpop.f32.mrb[4].mxu0  ;;  %1219 = vmatprep.subr.bf16.mxu1 %v1218_v21  ;;  %v1242_v27 = vpack.c.bf16 %v521_v26, %v520_v23 }
 0x1a5   :  { %v216_v32 = vpop.f32.mrb[5].mxu0  ;;  %v269_v43 = vmul.f32 %v1090_v30, %v1472_v13 }
 0x1a6   :  { %v267_v35 = vmul.f32 %v216_v32, %v1460_v62  ;;  %v1091_v38 = vpop.f32.mrb[6].mxu0  ;;  %1106 = vmatmul.mubr.msk.f32.gmra.mrb[2].mxu1 %vm280_vm0, %v266_v29 }
 0x1a7   :  { %v219_v40 = vpop.f32.mrb[7].mxu0  ;;  %1221 = vmatpush3.bf16.msra.mxu1 %v1218_v21  ;;  %v270_v51 = vmul.f32 %v1091_v38, %v1470_v9 }
 0x1a8   :  { %v268_v41 = vmul.f32 %v219_v40, %v1457_v57  ;;  %1108 = vmatprep.mubr.msk.f32.mxu1 %vm280_vm0, %v267_v35  ;;  %1223 = vmatprep.subr.bf16.mxu1 %v1222_v31 }
 0x1aa   :  { %1109 = vmatmul.mubr.msk.f32.gmra.mrb[4].mxu1 %vm280_vm0, %v268_v41 }
 0x1ab   :  { %1111 = vmatprep.mubr.msk.f32.mxu1 %vm280_vm0, %v269_v43  ;;  %1225 = vmatpush3.bf16.msra.mxu1 %v1222_v31 }
 0x1ac   :  { %v1094_v52 = vpop.f32.mrb[8].mxu0  ;;  %1227 = vmatprep.subr.bf16.mxu1 %v1226_v42 }
 0x1ad   :  { %v232_v54 = vpop.f32.mrb[9].mxu0  ;;  %v273_v4 = vmul.f32 %v1094_v52, %v1496_v37 }
 0x1ae   :  { %v271_v58 = vmul.f32 %v232_v54, %v1484_v28  ;;  %v1095_v61 = vpop.f32.mrb[10].mxu0  ;;  %1112 = vmatmul.mubr.msk.f32.gmra.mrb[6].mxu1 %vm280_vm0, %v270_v51 }
 0x1af   :  { %v235_v63 = vpop.f32.mrb[11].mxu0  ;;  %1229 = vmatpush3.bf16.msra.mxu1 %v1226_v42  ;;  %v274_v7 = vmul.f32 %v1095_v61, %v1494_v36 }
 0x1b0   :  { %v272_v0 = vmul.f32 %v235_v63, %v1482_v24  ;;  %1114 = vmatprep.mubr.msk.f32.mxu1 %vm280_vm0, %v271_v58  ;;  %1231 = vmatprep.subr.bf16.mxu1 %v1230_v53 }
 0x1b2   :  { %1115 = vmatmul.mubr.msk.f32.gmra.mrb[8].mxu1 %vm280_vm0, %v272_v0 }
 0x1b3   :  { %1117 = vmatprep.mubr.msk.f32.mxu1 %vm280_vm0, %v273_v4  ;;  %1233 = vmatpush3.bf16.msra.mxu1 %v1230_v53 }
 0x1b4   :  { %v1098_v10 = vpop.f32.mrb[12].mxu0  ;;  %1235 = vmatprep.subr.bf16.mxu1 %v1234_v3 }
 0x1b5   :  { %v248_v2 = vpop.f32.mrb[13].mxu0  ;;  %v277_v20 = vmul.f32 %v1098_v10, %v1520_v60 }
 0x1b6   :  { %v275_v14 = vmul.f32 %v248_v2, %v1508_v50  ;;  %v1099_v16 = vpop.f32.mrb[14].mxu0  ;;  %1118 = vmatmul.mubr.msk.f32.gmra.mrb[10].mxu1 %vm280_vm0, %v274_v7 }
 0x1b7   :  { %v251_v17 = vpop.f32.mrb[15].mxu0  ;;  %1237 = vmatpush3.bf16.msra.mxu1 %v1234_v3  ;;  %v278_v21 = vmul.f32 %v1099_v16, %v1518_v59 }
 0x1b8   :  { %v276_v19 = vmul.f32 %v251_v17, %v1506_v49  ;;  %1120 = vmatprep.mubr.msk.f32.mxu1 %vm280_vm0, %v275_v14  ;;  %1239 = vmatprep.subr.bf16.mxu1 %v1238_v12 }
 0x1ba   :  { %1121 = vmatmul.mubr.msk.f32.gmra.mrb[12].mxu1 %vm280_vm0, %v276_v19 }
 0x1bb   :  { %1123 = vmatprep.mubr.msk.f32.mxu1 %vm280_vm0, %v277_v20  ;;  %1241 = vmatpush3.bf16.msra.mxu1 %v1238_v12 }
 0x1bc   :  { %1243 = vmatprep.subr.bf16.mxu1 %v1242_v27 }
 0x1be   :  { %1124 = vmatmul.mubr.msk.f32.gmra.mrb[14].mxu1 %vm280_vm0, %v278_v21 }
 0x1bf   :  { %1245 = vmatpush3.bf16.msra.mxu1 %v1242_v27 }
 0x275   :  { %v1104_v29 = vpop.f32.mrb[0].mxu1 }
 0x276   :  { %v475_v30 = vmax.f32 %v1104_v29, 0.0  ;;  %v395_v31 = vpop.f32.mrb[1].mxu1 }
 0x277   :  { %v474_v32 = vmax.f32 %v395_v31, 0.0 }
 0x278   :  { %v491_v35 = vmul.f32 %v475_v30, %v1443_v48 }
 0x279   :  { %v490_v33 = vmul.f32 %v474_v32, %v1428_v39  ;;  %v1107_v34 = vpop.f32.mrb[2].mxu1 }
 0x27a   :  { %v477_v38 = vmax.f32 %v1107_v34, 0.0  ;;  %v405_v40 = vpop.f32.mrb[3].mxu1 }
 0x27b   :  { %v476_v41 = vmax.f32 %v405_v40, 0.0  ;;  %1158 = vmatprep.mubr.f32.mxu1 %v490_v33 }
 0x27c   :  { %1159 = vmatmul.mubr.f32.vlgmr.msra.gmra.mrb[16].mxu1 %v491_v35  ;;  %v493_v45 = vmul.f32 %v477_v38, %v1439_v44 }
 0x27d   :  { %v492_v42 = vmul.f32 %v476_v41, %v1441_v47  ;;  %v1110_v43 = vpop.f32.mrb[4].mxu1 }
 0x27e   :  { %v479_v46 = vmax.f32 %v1110_v43, 0.0  ;;  %v415_v51 = vpop.f32.mrb[5].mxu1 }
 0x27f   :  { %v478_v52 = vmax.f32 %v415_v51, 0.0  ;;  %1161 = vmatprep.mubr.f32.mxu1 %v492_v42 }
 0x280   :  { %1162 = vmatmul.mubr.f32.gmra.mrb[18].mxu1 %v493_v45  ;;  %v495_v55 = vmul.f32 %v479_v46, %v1457_v57 }
 0x281   :  { %v494_v53 = vmul.f32 %v478_v52, %v1460_v62  ;;  %v1113_v54 = vpop.f32.mrb[6].mxu1 }
 0x282   :  { %v481_v56 = vmax.f32 %v1113_v54, 0.0  ;;  %v425_v58 = vpop.f32.mrb[7].mxu1 }
 0x283   :  { %v480_v61 = vmax.f32 %v425_v58, 0.0  ;;  %1164 = vmatprep.mubr.f32.mxu1 %v494_v53 }
 0x284   :  { %1165 = vmatmul.mubr.f32.gmra.mrb[20].mxu1 %v495_v55  ;;  %v497_v3 = vmul.f32 %v481_v56, %v1470_v9 }
 0x285   :  { %v496_v63 = vmul.f32 %v480_v61, %v1472_v13  ;;  %v1116_v0 = vpop.f32.mrb[8].mxu1 }
 0x286   :  { %v483_v4 = vmax.f32 %v1116_v0, 0.0  ;;  %v435_v5 = vpop.f32.mrb[9].mxu1 }
 0x287   :  { %v482_v6 = vmax.f32 %v435_v5, 0.0  ;;  %1167 = vmatprep.mubr.f32.mxu1 %v496_v63 }
 0x288   :  { %1168 = vmatmul.mubr.f32.gmra.mrb[22].mxu1 %v497_v3  ;;  %v499_v12 = vmul.f32 %v483_v4, %v1482_v24 }
 0x289   :  { %v498_v7 = vmul.f32 %v482_v6, %v1484_v28  ;;  %v1119_v10 = vpop.f32.mrb[10].mxu1 }
 0x28a   :  { %v485_v2 = vmax.f32 %v1119_v10, 0.0  ;;  %v445_v14 = vpop.f32.mrb[11].mxu1 }
 0x28b   :  { %v484_v16 = vmax.f32 %v445_v14, 0.0  ;;  %1170 = vmatprep.mubr.f32.mxu1 %v498_v7 }
 0x28c   :  { %1171 = vmatmul.mubr.f32.gmra.mrb[24].mxu1 %v499_v12  ;;  %v501_v20 = vmul.f32 %v485_v2, %v1494_v36  ;;  %v788_v12 = vlaneseq }
 0x28d   :  { %v500_v17 = vmul.f32 %v484_v16, %v1496_v37  ;;  %v1122_v19 = vpop.f32.mrb[12].mxu1 }
 0x28e   :  { %v487_v21 = vmax.f32 %v1122_v19, 0.0  ;;  %v455_v23 = vpop.f32.mrb[13].mxu1  ;;  %v1638_v2 = vand.u32 127, %v788_v12 }
 0x28f   :  { %v486_v26 = vmax.f32 %v455_v23, 0.0  ;;  %1173 = vmatprep.mubr.f32.mxu1 %v500_v17 }
 0x290   :  { %1174 = vmatmul.mubr.f32.gmra.mrb[26].mxu1 %v501_v20  ;;  %v503_v30 = vmul.f32 %v487_v21, %v1506_v49  ;;  %vm790_vm1 = vcmp.lt.s32.totalorder %v1638_v2, 8 }
 0x291   :  { %v502_v27 = vmul.f32 %v486_v26, %v1508_v50  ;;  %v1125_v29 = vpop.f32.mrb[14].mxu1 }
 0x292   :  { %v489_v31 = vmax.f32 %v1125_v29, 0.0  ;;  %v465_v32 = vpop.f32.mrb[15].mxu1 }
 0x293   :  { %v488_v33 = vmax.f32 %v465_v32, 0.0  ;;  %1176 = vmatprep.mubr.f32.mxu1 %v502_v27 }
 0x294   :  { %1177 = vmatmul.mubr.f32.gmra.mrb[28].mxu1 %v503_v30  ;;  %v505_v35 = vmul.f32 %v489_v31, %v1518_v59 }
 0x295   :  { %v504_v34 = vmul.f32 %v488_v33, %v1520_v60 }
 0x297   :  { %1179 = vmatprep.mubr.f32.mxu1 %v504_v34 }
 0x298   :  { %1180 = vmatmul.mubr.f32.gmra.mrb[30].mxu1 %v505_v35 }
 0x299   :  { %1210 = vmatprep.mubr.bf16.mxu1 %v1420_v22 }
 0x34f   :  { %v1160_v38 = vpop.f32.mrb[16].mxu1 }
 0x350   :  { %v588_v40 = vpop.f32.mrb[17].mxu1 }
 0x351   :  { %v667_v41 = vpack.c.bf16 %v1160_v38, %v588_v40 }
 0x353   :  { %v1163_v42 = vpop.f32.mrb[18].mxu1  ;;  %1182 = vmatprep.subr.bf16.mxu0 %v667_v41  ;;  %1246 = vmatprep.subr.bf16.mxu1 %v667_v41 }
 0x354   :  { %v598_v43 = vpop.f32.mrb[19].mxu1  ;;  %1183 = vmatpush3.bf16.msra.mxu0 %v667_v41  ;;  %1254 = vmatpush3.bf16.msra.mxu1 %v667_v41 }
 0x355   :  { %v668_v45 = vpack.c.bf16 %v1163_v42, %v598_v43 }
 0x357   :  { %v1166_v46 = vpop.f32.mrb[20].mxu1  ;;  %1184 = vmatprep.subr.bf16.mxu0 %v668_v45  ;;  %1247 = vmatprep.subr.bf16.mxu1 %v668_v45 }
 0x358   :  { %v608_v51 = vpop.f32.mrb[21].mxu1  ;;  %1185 = vmatpush3.bf16.msra.mxu0 %v668_v45  ;;  %1255 = vmatpush3.bf16.msra.mxu1 %v668_v45 }
 0x359   :  { %v669_v52 = vpack.c.bf16 %v1166_v46, %v608_v51 }
 0x35b   :  { %v1169_v53 = vpop.f32.mrb[22].mxu1  ;;  %1186 = vmatprep.subr.bf16.mxu0 %v669_v52  ;;  %1248 = vmatprep.subr.bf16.mxu1 %v669_v52 }
 0x35c   :  { %v618_v22 = vpop.f32.mrb[23].mxu1  ;;  %1187 = vmatpush3.bf16.msra.mxu0 %v669_v52  ;;  %1256 = vmatpush3.bf16.msra.mxu1 %v669_v52 }
 0x35d   :  { %v670_v54 = vpack.c.bf16 %v1169_v53, %v618_v22 }
 0x35f   :  { %v1172_v55 = vpop.f32.mrb[24].mxu1  ;;  %1188 = vmatprep.subr.bf16.mxu0 %v670_v54  ;;  %1249 = vmatprep.subr.bf16.mxu1 %v670_v54 }
 0x360   :  { %v628_v56 = vpop.f32.mrb[25].mxu1  ;;  %1189 = vmatpush3.bf16.msra.mxu0 %v670_v54  ;;  %1257 = vmatpush3.bf16.msra.mxu1 %v670_v54 }
 0x361   :  { %v671_v58 = vpack.c.bf16 %v1172_v55, %v628_v56 }
 0x363   :  { %v1175_v61 = vpop.f32.mrb[26].mxu1  ;;  %1190 = vmatprep.subr.bf16.mxu0 %v671_v58  ;;  %1250 = vmatprep.subr.bf16.mxu1 %v671_v58 }
 0x364   :  { %v638_v63 = vpop.f32.mrb[27].mxu1  ;;  %1191 = vmatpush3.bf16.msra.mxu0 %v671_v58  ;;  %1258 = vmatpush3.bf16.msra.mxu1 %v671_v58 }
 0x365   :  { %v672_v0 = vpack.c.bf16 %v1175_v61, %v638_v63 }
 0x367   :  { %v1178_v3 = vpop.f32.mrb[28].mxu1  ;;  %1192 = vmatprep.subr.bf16.mxu0 %v672_v0  ;;  %1251 = vmatprep.subr.bf16.mxu1 %v672_v0 }
 0x368   :  { %v648_v4 = vpop.f32.mrb[29].mxu1  ;;  %1193 = vmatpush3.bf16.msra.mxu0 %v672_v0  ;;  %1259 = vmatpush3.bf16.msra.mxu1 %v672_v0 }
 0x369   :  { %v673_v5 = vpack.c.bf16 %v1178_v3, %v648_v4 }
 0x36b   :  { %v1181_v6 = vpop.f32.mrb[30].mxu1  ;;  %1194 = vmatprep.subr.bf16.mxu0 %v673_v5  ;;  %1252 = vmatprep.subr.bf16.mxu1 %v673_v5 }
 0x36c   :  { %v658_v7 = vpop.f32.mrb[31].mxu1  ;;  %1195 = vmatpush3.bf16.msra.mxu0 %v673_v5  ;;  %1260 = vmatpush3.bf16.msra.mxu1 %v673_v5 }
 0x36d   :  { %v674_v10 = vpack.c.bf16 %v1181_v6, %v658_v7 }
 0x36f   :  { %1196 = vmatprep.subr.bf16.mxu0 %v674_v10  ;;  %1253 = vmatprep.subr.bf16.mxu1 %v674_v10 }
 0x370   :  { %1197 = vmatpush3.bf16.msra.mxu0 %v674_v10  ;;  %1261 = vmatpush3.bf16.msra.mxu1 %v674_v10 }
 0x373   :  { %1199 = vmatmul.mubr.bf16.vlgmr.msra.gmra.mrb[16].mxu0 %v1386_v1  ;;  %1211 = vmatmul.mubr.bf16.vlgmr.msra.gmra.mrb[32].mxu1 %v1424_v25 }
 0x374   :  { %1202 = vmatprep.mubr.bf16.mxu0 %v1398_v8 }
 0x37b   :  { %1203 = vmatmul.mubr.bf16.gmra.mrb[20].mxu0 %v1402_v11 }
 0x37c   :  { %1206 = vmatprep.mubr.bf16.mxu0 %v1409_v15 }
 0x383   :  { %1207 = vmatmul.mubr.bf16.gmra.mrb[24].mxu0 %v1413_v18 }
 0x446   :  { %v1200_v14 = vpop.f32.mrb[16].mxu0  ;;  %v1212_v16 = vpop.f32.mrb[32].mxu1 }
 0x447   :  { %v774_v17 = vmul.f32 %v1200_v14, %v1441_v47  ;;  %v709_v1 = vpop.f32.mrb[17].mxu0  ;;  %v757_v19 = vpop.f32.mrb[33].mxu1 }
 0x448   :  { %v1201_v25 = vpop.f32.mrb[18].mxu0  ;;  %v1213_v20 = vpop.f32.mrb[34].mxu1  ;;  %v772_v8 = vmul.f32 %v709_v1, %v1428_v39  ;;  %v784_v47 = vmul.f32 %v757_v19, %v1508_v50 }
 0x449   :  { %v775_v11 = vmul.f32 %v1201_v25, %v1439_v44  ;;  %v712_v15 = vpop.f32.mrb[19].mxu0  ;;  %v760_v21 = vpop.f32.mrb[35].mxu1  ;;  %v793_v18 = vsel %vm790_vm1, %v774_v17, -inf }
 0x44a   :  { %811 = vmax.xlane.f32.xlu0 %v793_v18  ;;  %v773_v23 = vmul.f32 %v712_v15, %v1443_v48  ;;  %v791_v27 = vsel %vm790_vm1, %v772_v8, -inf  ;;  %v785_v44 = vmul.f32 %v760_v21, %v1506_v49  ;;  %v803_v33 = vsel %vm790_vm1, %v784_v47, -inf }
 0x44b   :  { %v794_v26 = vsel %vm790_vm1, %v775_v11, -inf }
 0x44c   :  { %813 = vmax.xlane.f32.xlu1 %v794_v26  ;;  %v792_v30 = vsel %vm790_vm1, %v773_v23, -inf  ;;  %v804_v34 = vsel %vm790_vm1, %v785_v44, -inf }
 0x44e   :  { %807 = vmax.xlane.f32.xlu0 %v791_v27  ;;  %v1204_v39 = vpop.f32.mrb[20].mxu0 }
 0x44f   :  { %v725_v29 = vpop.f32.mrb[21].mxu0  ;;  %v778_v48 = vmul.f32 %v1204_v39, %v1472_v13 }
 0x450   :  { %809 = vmax.xlane.f32.xlu1 %v792_v30  ;;  %v1205_v31 = vpop.f32.mrb[22].mxu0  ;;  %v776_v49 = vmul.f32 %v725_v29, %v1460_v62 }
 0x451   :  { %v728_v32 = vpop.f32.mrb[23].mxu0  ;;  %v779_v50 = vmul.f32 %v1205_v31, %v1470_v9  ;;  %v797_v35 = vsel %vm790_vm1, %v778_v48, -inf }
 0x452   :  { %831 = vmax.xlane.f32.xlu0 %v803_v33  ;;  %v777_v13 = vmul.f32 %v728_v32, %v1457_v57  ;;  %v795_v45 = vsel %vm790_vm1, %v776_v49, -inf }
 0x453   :  { %v798_v41 = vsel %vm790_vm1, %v779_v50, -inf }
 0x454   :  { %833 = vmax.xlane.f32.xlu1 %v804_v34  ;;  %v1673_v46 = vsel %vm790_vm1, %v777_v13, -inf }
 0x456   :  { %819 = vmax.xlane.f32.xlu0 %v797_v35  ;;  %v1208_v38 = vpop.f32.mrb[24].mxu0 }
 0x457   :  { %v741_v40 = vpop.f32.mrb[25].mxu0  ;;  %v782_v9 = vmul.f32 %v1208_v38, %v1496_v37 }
 0x458   :  { %821 = vmax.xlane.f32.xlu1 %v798_v41  ;;  %v1209_v42 = vpop.f32.mrb[26].mxu0  ;;  %v780_v57 = vmul.f32 %v741_v40, %v1484_v28  ;;  %v787_v28 = vmul.f32 %v1213_v20, %v1518_v59 }
 0x459   :  { %v744_v43 = vpop.f32.mrb[27].mxu0  ;;  %v783_v62 = vmul.f32 %v1209_v42, %v1494_v36  ;;  %v1679_v51 = vsel %vm790_vm1, %v782_v9, -inf  ;;  %v786_v36 = vmul.f32 %v1212_v16, %v1520_v60 }
 0x45a   :  { %815 = vmax.xlane.f32.xlu0 %v795_v45  ;;  %v781_v37 = vmul.f32 %v744_v43, %v1482_v24  ;;  %v1691_v53 = vsel %vm790_vm1, %v780_v57, -inf  ;;  %v1707_v60 = vsel %vm790_vm1, %v787_v28, -inf }
 0x45b   :  { %v1685_v52 = vsel %vm790_vm1, %v783_v62, -inf  ;;  %v1702_v24 = vsel %vm790_vm1, %v786_v36, -inf }
 0x45c   :  { %817 = vmax.xlane.f32.xlu1 %v1673_v46  ;;  %v1697_v22 = vsel %vm790_vm1, %v781_v37, -inf }
 0x45e   :  { %827 = vmax.xlane.f32.xlu0 %v1679_v51 }
 0x460   :  { %829 = vmax.xlane.f32.xlu1 %v1685_v52 }
 0x462   :  { %823 = vmax.xlane.f32.xlu0 %v1691_v53 }
 0x464   :  { %825 = vmax.xlane.f32.xlu1 %v1697_v22 }
 0x466   :  { %835 = vmax.xlane.f32.xlu0 %v1702_v24 }
 0x468   :  { %837 = vmax.xlane.f32.xlu1 %v1707_v60 }
 0x4d7   :  { %v812_v54 = vpop.xlane.xlu0 %811 }
 0x4d8   :  { %v841_v59 = vsub.f32 %v793_v18, %v812_v54 }
 0x4d9   :  { %v814_v55 = vpop.xlane.xlu1 %813 }
 0x4da   :  { %v859_v56 = vmul.f32 1.442695, %v841_v59  ;;  %v842_v58 = vsub.f32 %v794_v26, %v814_v55 }
 0x4db   :  { %v808_v61 = vpop.xlane.xlu0 %807 }
 0x4dc   :  { %1294 = vpow2.f32 %v859_v56  ;;  %v861_v63 = vmul.f32 1.442695, %v842_v58  ;;  %v839_v0 = vsub.f32 %v791_v27, %v808_v61 }
 0x4dd   :  { %v810_v3 = vpop.xlane.xlu1 %809 }
 0x4de   :  { %1296 = vpow2.f32 %v861_v63  ;;  %v855_v4 = vmul.f32 1.442695, %v839_v0  ;;  %v840_v5 = vsub.f32 %v792_v30, %v810_v3 }
 0x4df   :  { %v832_v6 = vpop.xlane.xlu0 %831 }
 0x4e0   :  { %1298 = vpow2.f32 %v855_v4  ;;  %v857_v7 = vmul.f32 1.442695, %v840_v5  ;;  %v851_v10 = vsub.f32 %v803_v33, %v832_v6 }
 0x4e1   :  { %v834_v12 = vpop.xlane.xlu1 %833 }
 0x4e2   :  { %1300 = vpow2.f32 %v857_v7  ;;  %v879_v2 = vmul.f32 1.442695, %v851_v10  ;;  %v852_v14 = vsub.f32 %v804_v34, %v834_v12 }
 0x4e3   :  { %v820_v16 = vpop.xlane.xlu0 %819 }
 0x4e4   :  { %1302 = vpow2.f32 %v879_v2  ;;  %v881_v17 = vmul.f32 1.442695, %v852_v14  ;;  %v845_v1 = vsub.f32 %v797_v35, %v820_v16 }
 0x4e5   :  { %v822_v19 = vpop.xlane.xlu1 %821 }
 0x4e6   :  { %v1710_v25 = vpop.eup %1294  ;;  %1304 = vpow2.f32 %v881_v17  ;;  %v867_v20 = vmul.f32 1.442695, %v845_v1  ;;  %v846_v8 = vsub.f32 %v798_v41, %v822_v19 }
 0x4e7   :  { %v816_v11 = vpop.xlane.xlu0 %815  ;;  %891 = vadd.xlane.f32.xlu0 %v1710_v25 }
 0x4e8   :  { %v1713_v15 = vpop.eup %1296  ;;  %1306 = vpow2.f32 %v867_v20  ;;  %v869_v21 = vmul.f32 1.442695, %v846_v8  ;;  %v843_v18 = vsub.f32 %v795_v45, %v816_v11 }
 0x4e9   :  { %v818_v23 = vpop.xlane.xlu1 %817  ;;  %893 = vadd.xlane.f32.xlu1 %v1713_v15 }
 0x4ea   :  { %v1716_v26 = vpop.eup %1298  ;;  %1308 = vpow2.f32 %v869_v21  ;;  %v863_v47 = vmul.f32 1.442695, %v843_v18  ;;  %v844_v27 = vsub.f32 %v1673_v46, %v818_v23 }
 0x4eb   :  { %v828_v39 = vpop.xlane.xlu0 %827  ;;  %887 = vadd.xlane.f32.xlu0 %v1716_v26 }
 0x4ec   :  { %v1720_v44 = vpop.eup %1300  ;;  %1310 = vpow2.f32 %v863_v47  ;;  %v865_v29 = vmul.f32 1.442695, %v844_v27  ;;  %v849_v30 = vsub.f32 %v1679_v51, %v828_v39 }
 0x4ed   :  { %v830_v31 = vpop.xlane.xlu1 %829  ;;  %889 = vadd.xlane.f32.xlu1 %v1720_v44 }
 0x4ee   :  { %v1724_v48 = vpop.eup %1302  ;;  %1312 = vpow2.f32 %v865_v29  ;;  %v875_v32 = vmul.f32 1.442695, %v849_v30  ;;  %v850_v33 = vsub.f32 %v1685_v52, %v830_v31 }
 0x4ef   :  { %911 = vadd.xlane.f32.xlu0 %v1724_v48  ;;  %v824_v50 = vpop.xlane.xlu0 %823 }
 0x4f0   :  { %v1728_v34 = vpop.eup %1304  ;;  %1314 = vpow2.f32 %v875_v32  ;;  %v877_v49 = vmul.f32 1.442695, %v850_v33  ;;  %v847_v35 = vsub.f32 %v1691_v53, %v824_v50 }
 0x4f1   :  { %913 = vadd.xlane.f32.xlu1 %v1728_v34  ;;  %v826_v38 = vpop.xlane.xlu1 %825 }
 0x4f2   :  { %v1732_v13 = vpop.eup %1306  ;;  %1316 = vpow2.f32 %v877_v49  ;;  %v871_v40 = vmul.f32 1.442695, %v847_v35  ;;  %v848_v41 = vsub.f32 %v1697_v22, %v826_v38 }
 0x4f3   :  { %899 = vadd.xlane.f32.xlu0 %v1732_v13  ;;  %v836_v42 = vpop.xlane.xlu0 %835 }
 0x4f4   :  { %v1736_v9 = vpop.eup %1308  ;;  %1318 = vpow2.f32 %v871_v40  ;;  %v873_v43 = vmul.f32 1.442695, %v848_v41  ;;  %v853_v45 = vsub.f32 %v1702_v24, %v836_v42 }
 0x4f5   :  { %901 = vadd.xlane.f32.xlu1 %v1736_v9  ;;  %v838_v62 = vpop.xlane.xlu1 %837 }
 0x4f6   :  { %v1740_v46 = vpop.eup %1310  ;;  %1320 = vpow2.f32 %v873_v43  ;;  %v883_v57 = vmul.f32 1.442695, %v853_v45  ;;  %v854_v51 = vsub.f32 %v1707_v60, %v838_v62 }
 0x4f7   :  { %895 = vadd.xlane.f32.xlu0 %v1740_v46 }
 0x4f8   :  { %v1744_v37 = vpop.eup %1312  ;;  %1322 = vpow2.f32 %v883_v57  ;;  %v885_v52 = vmul.f32 1.442695, %v854_v51 }
 0x4f9   :  { %897 = vadd.xlane.f32.xlu1 %v1744_v37 }
 0x4fa   :  { %v1747_v36 = vpop.eup %1314  ;;  %1324 = vpow2.f32 %v885_v52 }
 0x4fb   :  { %907 = vadd.xlane.f32.xlu0 %v1747_v36 }
 0x4fc   :  { %v1750_v53 = vpop.eup %1316 }
 0x4fd   :  { %909 = vadd.xlane.f32.xlu1 %v1750_v53 }
 0x4fe   :  { %v1753_v28 = vpop.eup %1318 }
 0x4ff   :  { %903 = vadd.xlane.f32.xlu0 %v1753_v28 }
 0x500   :  { %v1756_v22 = vpop.eup %1320 }
 0x501   :  { %905 = vadd.xlane.f32.xlu1 %v1756_v22 }
 0x502   :  { %v1759_v24 = vpop.eup %1322 }
 0x503   :  { %915 = vadd.xlane.f32.xlu0 %v1759_v24 }
 0x504   :  { %v1762_v60 = vpop.eup %1324 }
 0x505   :  { %917 = vadd.xlane.f32.xlu1 %v1762_v60 }
 0x574   :  { %v892_v54 = vpop.xlane.xlu0 %891 }
 0x575   :  { %1326 = vrcp.f32 %v892_v54 }
 0x576   :  { %v894_v59 = vpop.xlane.xlu1 %893 }
 0x577   :  { %1328 = vrcp.f32 %v894_v59 }
 0x578   :  { %v888_v55 = vpop.xlane.xlu0 %887 }
 0x579   :  { %1330 = vrcp.f32 %v888_v55 }
 0x57a   :  { %v890_v56 = vpop.xlane.xlu1 %889 }
 0x57b   :  { %1332 = vrcp.f32 %v890_v56 }
 0x57c   :  { %v912_v58 = vpop.xlane.xlu0 %911 }
 0x57d   :  { %1334 = vrcp.f32 %v912_v58 }
 0x57e   :  { %v914_v61 = vpop.xlane.xlu1 %913 }
 0x57f   :  { %v1327_v63 = vpop.eup %1326  ;;  %1336 = vrcp.f32 %v914_v61 }
 0x580   :  { %v924_v0 = vmul.f32 %v1327_v63, %v1710_v25  ;;  %v900_v3 = vpop.xlane.xlu0 %899 }
 0x581   :  { %v1329_v4 = vpop.eup %1328  ;;  %1338 = vrcp.f32 %v900_v3 }
 0x582   :  { %953 = vst [vmem:[%s1833_s4 + $0x10] sm:$0xff] %v924_v0  ;;  %v926_v5 = vmul.f32 %v1329_v4, %v1713_v15  ;;  %v902_v6 = vpop.xlane.xlu1 %901 }
 0x583   :  { %v1331_v7 = vpop.eup %1330  ;;  %1340 = vrcp.f32 %v902_v6 }
 0x584   :  { %954 = vst [vmem:[%s1833_s4 + $0x18] sm:$0xff] %v926_v5  ;;  %v920_v10 = vmul.f32 %v1331_v7, %v1716_v26  ;;  %v896_v12 = vpop.xlane.xlu0 %895 }
 0x585   :  { %v1333_v2 = vpop.eup %1332  ;;  %1342 = vrcp.f32 %v896_v12 }
 0x586   :  { %951 = vst [vmem:[%s1833_s4] sm:$0xff] %v920_v10  ;;  %v922_v14 = vmul.f32 %v1333_v2, %v1720_v44  ;;  %v898_v16 = vpop.xlane.xlu1 %897 }
 0x587   :  { %v1335_v17 = vpop.eup %1334  ;;  %1344 = vrcp.f32 %v898_v16 }
 0x588   :  { %952 = vst [vmem:[%s1833_s4 + $0x8] sm:$0xff] %v922_v14  ;;  %v944_v1 = vmul.f32 %v1335_v17, %v1724_v48  ;;  %v908_v19 = vpop.xlane.xlu0 %907 }
 0x589   :  { %v1337_v25 = vpop.eup %1336  ;;  %1346 = vrcp.f32 %v908_v19 }
 0x58a   :  { %963 = vst [vmem:[%s1833_s4 + $0x60] sm:$0xff] %v944_v1  ;;  %v946_v20 = vmul.f32 %v1337_v25, %v1728_v34  ;;  %v910_v8 = vpop.xlane.xlu1 %909 }
 0x58b   :  { %v1339_v11 = vpop.eup %1338  ;;  %1348 = vrcp.f32 %v910_v8 }
 0x58c   :  { %964 = vst [vmem:[%s1833_s4 + $0x68] sm:$0xff] %v946_v20  ;;  %v932_v15 = vmul.f32 %v1339_v11, %v1732_v13  ;;  %v904_v21 = vpop.xlane.xlu0 %903 }
 0x58d   :  { %v1341_v18 = vpop.eup %1340  ;;  %1350 = vrcp.f32 %v904_v21 }
 0x58e   :  { %957 = vst [vmem:[%s1833_s4 + $0x30] sm:$0xff] %v932_v15  ;;  %v934_v23 = vmul.f32 %v1341_v18, %v1736_v9  ;;  %v906_v26 = vpop.xlane.xlu1 %905 }
 0x58f   :  { %v1343_v47 = vpop.eup %1342  ;;  %1352 = vrcp.f32 %v906_v26 }
 0x590   :  { %958 = vst [vmem:[%s1833_s4 + $0x38] sm:$0xff] %v934_v23  ;;  %v928_v27 = vmul.f32 %v1343_v47, %v1740_v46  ;;  %v916_v39 = vpop.xlane.xlu0 %915 }
 0x591   :  { %v1345_v44 = vpop.eup %1344  ;;  %1354 = vrcp.f32 %v916_v39 }
 0x592   :  { %955 = vst [vmem:[%s1833_s4 + $0x20] sm:$0xff] %v928_v27  ;;  %v930_v29 = vmul.f32 %v1345_v44, %v1744_v37  ;;  %v918_v30 = vpop.xlane.xlu1 %917 }
 0x593   :  { %v1347_v31 = vpop.eup %1346  ;;  %1356 = vrcp.f32 %v918_v30 }
 0x594   :  { %956 = vst [vmem:[%s1833_s4 + $0x28] sm:$0xff] %v930_v29  ;;  %v940_v48 = vmul.f32 %v1347_v31, %v1747_v36 }
 0x595   :  { %v1349_v32 = vpop.eup %1348 }
 0x596   :  { %961 = vst [vmem:[%s1833_s4 + $0x50] sm:$0xff] %v940_v48  ;;  %v942_v33 = vmul.f32 %v1349_v32, %v1750_v53 }
 0x597   :  { %v1351_v50 = vpop.eup %1350 }
 0x598   :  { %962 = vst [vmem:[%s1833_s4 + $0x58] sm:$0xff] %v942_v33  ;;  %v936_v34 = vmul.f32 %v1351_v50, %v1753_v28 }
 0x599   :  { %v1353_v49 = vpop.eup %1352 }
 0x59a   :  { %959 = vst [vmem:[%s1833_s4 + $0x40] sm:$0xff] %v936_v34  ;;  %v938_v35 = vmul.f32 %v1353_v49, %v1756_v22 }
 0x59b   :  { %v1355_v38 = vpop.eup %1354 }
 0x59c   :  { %960 = vst [vmem:[%s1833_s4 + $0x48] sm:$0xff] %v938_v35  ;;  %v948_v13 = vmul.f32 %v1355_v38, %v1759_v24 }
 0x59d   :  { %v1357_v40 = vpop.eup %1356 }
 0x59e   :  { %965 = vst [vmem:[%s1833_s4 + $0x70] sm:$0xff] %v948_v13  ;;  %v950_v41 = vmul.f32 %v1357_v40, %v1762_v60 }
 0x5a0   :  { %966 = vst [vmem:[%s1833_s4 + $0x78] sm:$0xff] %v950_v41 }

</bundles_post_ra>
